<compile_context>
chip_gen: v7x
topology: tpu7x:2x2x1
jax: 0.10.0
libtpu: 0.0.40
codegen_flags: <defaults>
</compile_context>

<pallas_src>
import functools

import jax
import jax.numpy as jnp
from jax import lax
from jax.experimental import pallas as pl
from jax.experimental.pallas import tpu as pltpu


def _conv3x3_flat(x_flat, w_ref, b_ref, lmask, rmask, pad_ref, p_ref, *, width, hw):
    """3x3 same-padding conv on a channel-major, spatially flattened tile.

    x_flat : (Cin, H*W)  f32 value       (lane-dense: H*W on lanes)
    w_ref  : (Cout, 9*Cin) VMEM ref      (im2col weight matrix, taps (kh,kw) major)
    b_ref  : (Cout, 1)  VMEM ref
    lmask  : (1, H*W)   f32 value        (0 where w == 0,   else 1)
    rmask  : (1, H*W)   f32 value        (0 where w == W-1, else 1)
    pad_ref: (Cin, H*W + 2*(W+1)) VMEM scratch  (flat zero-halo buffer)
    p_ref  : (9*Cin, H*W) VMEM scratch          (im2col patch matrix)
    returns: (Cout, H*W) f32
    """
    cin = x_flat.shape[0]
    halo = width + 1

    # Zero-halo buffer: implicit zero padding for the h = -1 / h = H rows.
    pad_ref[...] = jnp.zeros_like(pad_ref)
    pad_ref[:, halo:halo + hw] = x_flat

    # Build the (9*Cin, H*W) im2col matrix from 9 static lane-shifted reads.
    t = 0
    for dh in (-1, 0, 1):
        for dw in (-1, 0, 1):
            start = halo + dh * width + dw
            patch = pad_ref[:, start:start + hw]
            if dw == -1:
                patch = patch * lmask     # kill w == 0 column (wrapped reads)
            elif dw == 1:
                patch = patch * rmask     # kill w == W-1 column
            p_ref[t * cin:(t + 1) * cin, :] = patch
            t += 1

    # Single MXU matmul per conv: (Cout, 9*Cin) @ (9*Cin, H*W).
    y = jnp.dot(w_ref[...], p_ref[...], preferred_element_type=jnp.float32)
    return y + b_ref[...].astype(jnp.float32)


def _res_block_kernel(x_ref, w1_ref, b1_ref, w2_ref, b2_ref, m_ref, o_ref,
                      pad_ref, p_ref, *, width, hw, res_scale):
    x = x_ref[0].astype(jnp.float32)             # (C, H*W)
    lmask = m_ref[0:1, :].astype(jnp.float32)    # (1, H*W)
    rmask = m_ref[1:2, :].astype(jnp.float32)

    h = _conv3x3_flat(x, w1_ref, b1_ref, lmask, rmask, pad_ref, p_ref,
                      width=width, hw=hw)
    h = jnp.maximum(h, 0.0)                      # nn.ReLU(True)
    r = _conv3x3_flat(h, w2_ref, b2_ref, lmask, rmask, pad_ref, p_ref,
                      width=width, hw=hw)
    if res_scale != 1:
        r = r * res_scale
    o_ref[0] = (r + x).astype(o_ref.dtype)       # residual add


def res_block(x, w1, b1, w2, b2, res_scale=1):
    """Forward pass of ResBlock (bn=False, act=ReLU, kernel_size=3).

    x : (N, C, H, W) f32   (PyTorch NCHW layout)
    w1, w2 : (C, C, 3, 3)  nn.Conv2d weight layout (OIHW)
    b1, b2 : (C,)
    returns: (N, C, H, W)
    """
    N, C, H, W = x.shape
    HW = H * W
    HWP = HW + 2 * (W + 1)                       # flat buffer with zero halos

    # Free reshapes only -- stays in NCHW order end to end.
    x_flat = x.reshape(N, C, HW)
    # im2col weight matrices: [cout, (kh*3 + kw)*Cin + cin]
    w1m = jnp.transpose(w1, (0, 2, 3, 1)).reshape(C, 9 * C)
    w2m = jnp.transpose(w2, (0, 2, 3, 1)).reshape(C, 9 * C)
    b1c = b1.reshape(C, 1)
    b2c = b2.reshape(C, 1)

    # Column-validity masks for the horizontal taps (computed once, tiny).
    w_idx = jnp.arange(HW, dtype=jnp.int32) % W
    masks = jnp.stack([
        (w_idx != 0).astype(x.dtype),            # valid columns for dw = -1
        (w_idx != W - 1).astype(x.dtype),        # valid columns for dw = +1
    ])                                           # (2, HW)

    kernel = functools.partial(_res_block_kernel, width=W, hw=HW,
                               res_scale=res_scale)

    out_flat = pl.pallas_call(
        kernel,
        out_shape=jax.ShapeDtypeStruct((N, C, HW), x.dtype),
        grid_spec=pltpu.PrefetchScalarGridSpec(
            num_scalar_prefetch=0,
            grid=(N,),
            in_specs=[
                pl.BlockSpec((1, C, HW), lambda n: (n, 0, 0)),   # x (lane-dense)
                pl.BlockSpec((C, 9 * C), lambda n: (0, 0)),      # w1 (resident)
                pl.BlockSpec((C, 1), lambda n: (0, 0)),          # b1
                pl.BlockSpec((C, 9 * C), lambda n: (0, 0)),      # w2
                pl.BlockSpec((C, 1), lambda n: (0, 0)),          # b2
                pl.BlockSpec((2, HW), lambda n: (0, 0)),         # column masks
            ],
            out_specs=pl.BlockSpec((1, C, HW), lambda n: (n, 0, 0)),
            scratch_shapes=[
                pltpu.VMEM((C, HWP), jnp.float32),               # zero-halo buffer
                pltpu.VMEM((9 * C, HW), jnp.float32),            # im2col matrix
            ],
        ),
        compiler_params=pltpu.CompilerParams(
            dimension_semantics=("parallel",),    # megacore: shard batch on v7x
        ),
    )(x_flat, w1m, b1c, w2m, b2c, masks)

    return out_flat.reshape(N, C, H, W)


def _reference(x, w1, b1, w2, b2, res_scale=1):
    def conv(z, w, b):
        y = lax.conv_general_dilated(
            z, w, window_strides=(1, 1), padding=((1, 1), (1, 1)),
            dimension_numbers=("NCHW", "OIHW", "NCHW"),
            precision=lax.Precision.HIGHEST)
        return y + b.reshape(1, -1, 1, 1)

    h = jnp.maximum(conv(x, w1, b1), 0.0)
    r = conv(h, w2, b2)
    if res_scale != 1:
        r = r * res_scale
    return r + x


if __name__ == "__main__":
    key = jax.random.PRNGKey(0)
    kx, kw1, kb1, kw2, kb2 = jax.random.split(key, 5)

    # Small shapes consistent with the module: num_feature channels, square spatial.
    N, C, H, W = 2, 4, 16, 16

    x = jax.random.normal(kx, (N, C, H, W), dtype=jnp.float32)

    # nn.Conv2d default init bounds: U(-1/sqrt(fan_in), 1/sqrt(fan_in))
    fan_in = C * 3 * 3
    bound = 1.0 / (fan_in ** 0.5)
    w1 = jax.random.uniform(kw1, (C, C, 3, 3), minval=-bound, maxval=bound,
                            dtype=jnp.float32)
    b1 = jax.random.uniform(kb1, (C,), minval=-bound, maxval=bound,
                            dtype=jnp.float32)
    w2 = jax.random.uniform(kw2, (C, C, 3, 3), minval=-bound, maxval=bound,
                            dtype=jnp.float32)
    b2 = jax.random.uniform(kb2, (C,), minval=-bound, maxval=bound,
                            dtype=jnp.float32)

    out = res_block(x, w1, b1, w2, b2)
    out = jax.block_until_ready(out)

    ref = _reference(x, w1, b1, w2, b2)
    assert out.shape == (N, C, H, W)
    assert jnp.allclose(out, ref, atol=1e-4, rtol=1e-4), "mismatch vs reference"

    print("KERNEL_OK")
</pallas_src>

<mosaic_0001>
module attributes {stable_mosaic.version = 11 : i64} {
  func.func @_res_block_kernel(%arg0: i32, %arg1: memref<1x4x256xf32, #tpu.memory_space<vmem>>, %arg2: memref<4x36xf32, #tpu.memory_space<vmem>>, %arg3: memref<4x1xf32, #tpu.memory_space<vmem>>, %arg4: memref<4x36xf32, #tpu.memory_space<vmem>>, %arg5: memref<4x1xf32, #tpu.memory_space<vmem>>, %arg6: memref<2x256xf32, #tpu.memory_space<vmem>>, %arg7: memref<1x4x256xf32, #tpu.memory_space<vmem>>, %arg8: memref<4x290xf32, #tpu.memory_space<vmem>>, %arg9: memref<36x256xf32, #tpu.memory_space<vmem>>) attributes {dimension_semantics = [#tpu.dimension_semantics<parallel>], iteration_bounds = array<i64: 2>, scalar_prefetch = 0 : i64, scratch_operands = 2 : i64, tpu.core_type = #tpu.core_type<tc>, window_params = [{transform_indices = @transform_0, window_bounds = array<i64: 1, 4, 256>}, {pipeline_mode = #tpu.pipeline_mode<synchronous>, transform_indices = @transform_1, window_bounds = array<i64: 4, 36>}, {pipeline_mode = #tpu.pipeline_mode<synchronous>, transform_indices = @transform_2, window_bounds = array<i64: 4, 1>}, {pipeline_mode = #tpu.pipeline_mode<synchronous>, transform_indices = @transform_3, window_bounds = array<i64: 4, 36>}, {pipeline_mode = #tpu.pipeline_mode<synchronous>, transform_indices = @transform_4, window_bounds = array<i64: 4, 1>}, {pipeline_mode = #tpu.pipeline_mode<synchronous>, transform_indices = @transform_5, window_bounds = array<i64: 2, 256>}, {transform_indices = @transform_6, window_bounds = array<i64: 1, 4, 256>}]} {
    %c0 = arith.constant 0 : index
    %c0_0 = arith.constant 0 : index
    %c0_1 = arith.constant 0 : index
    %0 = vector.load %arg1[%c0, %c0_0, %c0_1] : memref<1x4x256xf32, #tpu.memory_space<vmem>>, vector<1x4x256xf32>
    %1 = vector.shape_cast %0 : vector<1x4x256xf32> to vector<4x256xf32>
    %c0_2 = arith.constant 0 : index
    %c0_3 = arith.constant 0 : index
    %2 = vector.load %arg6[%c0_2, %c0_3] : memref<2x256xf32, #tpu.memory_space<vmem>>, vector<1x256xf32>
    %c1 = arith.constant 1 : index
    %c0_4 = arith.constant 0 : index
    %3 = vector.load %arg6[%c1, %c0_4] : memref<2x256xf32, #tpu.memory_space<vmem>>, vector<1x256xf32>
    %cst = arith.constant 0.000000e+00 : f32
    %4 = vector.broadcast %cst : f32 to vector<4x290xf32>
    %c0_5 = arith.constant 0 : index
    %c0_6 = arith.constant 0 : index
    %5 = vector.load %arg8[%c0_5, %c0_6] : memref<4x290xf32, #tpu.memory_space<vmem>>, vector<4x290xf32>
    tpu.vector_store %arg8[%c0_5, %c0_6], %4 {strides = array<i32>} : memref<4x290xf32, #tpu.memory_space<vmem>>, vector<4x290xf32>,
    %c0_7 = arith.constant 0 : index
    %c17 = arith.constant 17 : index
    %6 = vector.load %arg8[%c0_7, %c17] : memref<4x290xf32, #tpu.memory_space<vmem>>, vector<4x256xf32>
    tpu.vector_store %arg8[%c0_7, %c17], %1 {strides = array<i32>} : memref<4x290xf32, #tpu.memory_space<vmem>>, vector<4x256xf32>,
    %c0_8 = arith.constant 0 : index
    %c0_9 = arith.constant 0 : index
    %7 = vector.load %arg8[%c0_8, %c0_9] : memref<4x290xf32, #tpu.memory_space<vmem>>, vector<4x256xf32>
    %8 = vector.broadcast %2 : vector<1x256xf32> to vector<4x256xf32>
    %9 = arith.mulf %7, %8 : vector<4x256xf32>
    %c0_10 = arith.constant 0 : index
    %c0_11 = arith.constant 0 : index
    %10 = vector.load %arg9[%c0_10, %c0_11] : memref<36x256xf32, #tpu.memory_space<vmem>>, vector<4x256xf32>
    tpu.vector_store %arg9[%c0_10, %c0_11], %9 {strides = array<i32>} : memref<36x256xf32, #tpu.memory_space<vmem>>, vector<4x256xf32>,
    %c0_12 = arith.constant 0 : index
    %c1_13 = arith.constant 1 : index
    %11 = vector.load %arg8[%c0_12, %c1_13] : memref<4x290xf32, #tpu.memory_space<vmem>>, vector<4x256xf32>
    %c4 = arith.constant 4 : index
    %c0_14 = arith.constant 0 : index
    %12 = vector.load %arg9[%c4, %c0_14] : memref<36x256xf32, #tpu.memory_space<vmem>>, vector<4x256xf32>
    tpu.vector_store %arg9[%c4, %c0_14], %11 {strides = array<i32>} : memref<36x256xf32, #tpu.memory_space<vmem>>, vector<4x256xf32>,
    %c0_15 = arith.constant 0 : index
    %c2 = arith.constant 2 : index
    %13 = vector.load %arg8[%c0_15, %c2] : memref<4x290xf32, #tpu.memory_space<vmem>>, vector<4x256xf32>
    %14 = vector.broadcast %3 : vector<1x256xf32> to vector<4x256xf32>
    %15 = arith.mulf %13, %14 : vector<4x256xf32>
    %c8 = arith.constant 8 : index
    %c0_16 = arith.constant 0 : index
    %16 = vector.load %arg9[%c8, %c0_16] : memref<36x256xf32, #tpu.memory_space<vmem>>, vector<4x256xf32>
    tpu.vector_store %arg9[%c8, %c0_16], %15 {strides = array<i32>} : memref<36x256xf32, #tpu.memory_space<vmem>>, vector<4x256xf32>,
    %c0_17 = arith.constant 0 : index
    %c16 = arith.constant 16 : index
    %17 = vector.load %arg8[%c0_17, %c16] : memref<4x290xf32, #tpu.memory_space<vmem>>, vector<4x256xf32>
    %18 = vector.broadcast %2 : vector<1x256xf32> to vector<4x256xf32>
    %19 = arith.mulf %17, %18 : vector<4x256xf32>
    %c12 = arith.constant 12 : index
    %c0_18 = arith.constant 0 : index
    %20 = vector.load %arg9[%c12, %c0_18] : memref<36x256xf32, #tpu.memory_space<vmem>>, vector<4x256xf32>
    tpu.vector_store %arg9[%c12, %c0_18], %19 {strides = array<i32>} : memref<36x256xf32, #tpu.memory_space<vmem>>, vector<4x256xf32>,
    %c0_19 = arith.constant 0 : index
    %c17_20 = arith.constant 17 : index
    %21 = vector.load %arg8[%c0_19, %c17_20] : memref<4x290xf32, #tpu.memory_space<vmem>>, vector<4x256xf32>
    %c16_21 = arith.constant 16 : index
    %c0_22 = arith.constant 0 : index
    %22 = vector.load %arg9[%c16_21, %c0_22] : memref<36x256xf32, #tpu.memory_space<vmem>>, vector<4x256xf32>
    tpu.vector_store %arg9[%c16_21, %c0_22], %21 {strides = array<i32>} : memref<36x256xf32, #tpu.memory_space<vmem>>, vector<4x256xf32>,
    %c0_23 = arith.constant 0 : index
    %c18 = arith.constant 18 : index
    %23 = vector.load %arg8[%c0_23, %c18] : memref<4x290xf32, #tpu.memory_space<vmem>>, vector<4x256xf32>
    %24 = vector.broadcast %3 : vector<1x256xf32> to vector<4x256xf32>
    %25 = arith.mulf %23, %24 : vector<4x256xf32>
    %c20 = arith.constant 20 : index
    %c0_24 = arith.constant 0 : index
    %26 = vector.load %arg9[%c20, %c0_24] : memref<36x256xf32, #tpu.memory_space<vmem>>, vector<4x256xf32>
    tpu.vector_store %arg9[%c20, %c0_24], %25 {strides = array<i32>} : memref<36x256xf32, #tpu.memory_space<vmem>>, vector<4x256xf32>,
    %c0_25 = arith.constant 0 : index
    %c32 = arith.constant 32 : index
    %27 = vector.load %arg8[%c0_25, %c32] : memref<4x290xf32, #tpu.memory_space<vmem>>, vector<4x256xf32>
    %28 = vector.broadcast %2 : vector<1x256xf32> to vector<4x256xf32>
    %29 = arith.mulf %27, %28 : vector<4x256xf32>
    %c24 = arith.constant 24 : index
    %c0_26 = arith.constant 0 : index
    %30 = vector.load %arg9[%c24, %c0_26] : memref<36x256xf32, #tpu.memory_space<vmem>>, vector<4x256xf32>
    tpu.vector_store %arg9[%c24, %c0_26], %29 {strides = array<i32>} : memref<36x256xf32, #tpu.memory_space<vmem>>, vector<4x256xf32>,
    %c0_27 = arith.constant 0 : index
    %c33 = arith.constant 33 : index
    %31 = vector.load %arg8[%c0_27, %c33] : memref<4x290xf32, #tpu.memory_space<vmem>>, vector<4x256xf32>
    %c28 = arith.constant 28 : index
    %c0_28 = arith.constant 0 : index
    %32 = vector.load %arg9[%c28, %c0_28] : memref<36x256xf32, #tpu.memory_space<vmem>>, vector<4x256xf32>
    tpu.vector_store %arg9[%c28, %c0_28], %31 {strides = array<i32>} : memref<36x256xf32, #tpu.memory_space<vmem>>, vector<4x256xf32>,
    %c0_29 = arith.constant 0 : index
    %c34 = arith.constant 34 : index
    %33 = vector.load %arg8[%c0_29, %c34] : memref<4x290xf32, #tpu.memory_space<vmem>>, vector<4x256xf32>
    %34 = vector.broadcast %3 : vector<1x256xf32> to vector<4x256xf32>
    %35 = arith.mulf %33, %34 : vector<4x256xf32>
    %c32_30 = arith.constant 32 : index
    %c0_31 = arith.constant 0 : index
    %36 = vector.load %arg9[%c32_30, %c0_31] : memref<36x256xf32, #tpu.memory_space<vmem>>, vector<4x256xf32>
    tpu.vector_store %arg9[%c32_30, %c0_31], %35 {strides = array<i32>} : memref<36x256xf32, #tpu.memory_space<vmem>>, vector<4x256xf32>,
    %c0_32 = arith.constant 0 : index
    %c0_33 = arith.constant 0 : index
    %37 = vector.load %arg2[%c0_32, %c0_33] : memref<4x36xf32, #tpu.memory_space<vmem>>, vector<4x36xf32>
    %c0_34 = arith.constant 0 : index
    %c0_35 = arith.constant 0 : index
    %38 = vector.load %arg9[%c0_34, %c0_35] : memref<36x256xf32, #tpu.memory_space<vmem>>, vector<36x256xf32>
    %cst_36 = arith.constant dense<0.000000e+00> : vector<4x256xf32>
    %39 = tpu.matmul %37, %38, %cst_36 {dimension_numbers = #tpu.dot_dimension_numbers<[1], [0], [0], [1], [0, 0, 1, 1], [], []>} : vector<4x36xf32>, vector<36x256xf32>, vector<4x256xf32> -> vector<4x256xf32>
    %c0_37 = arith.constant 0 : index
    %c0_38 = arith.constant 0 : index
    %40 = vector.load %arg3[%c0_37, %c0_38] : memref<4x1xf32, #tpu.memory_space<vmem>>, vector<4x1xf32>
    %41 = vector.broadcast %40 : vector<4x1xf32> to vector<4x256xf32>
    %42 = arith.addf %39, %41 : vector<4x256xf32>
    %cst_39 = arith.constant 0.000000e+00 : f32
    %43 = vector.broadcast %cst_39 : f32 to vector<4x256xf32>
    %44 = arith.maximumf %42, %43 : vector<4x256xf32>
    %cst_40 = arith.constant 0.000000e+00 : f32
    %45 = vector.broadcast %cst_40 : f32 to vector<4x290xf32>
    %c0_41 = arith.constant 0 : index
    %c0_42 = arith.constant 0 : index
    %46 = vector.load %arg8[%c0_41, %c0_42] : memref<4x290xf32, #tpu.memory_space<vmem>>, vector<4x290xf32>
    tpu.vector_store %arg8[%c0_41, %c0_42], %45 {strides = array<i32>} : memref<4x290xf32, #tpu.memory_space<vmem>>, vector<4x290xf32>,
    %c0_43 = arith.constant 0 : index
    %c17_44 = arith.constant 17 : index
    %47 = vector.load %arg8[%c0_43, %c17_44] : memref<4x290xf32, #tpu.memory_space<vmem>>, vector<4x256xf32>
    tpu.vector_store %arg8[%c0_43, %c17_44], %44 {strides = array<i32>} : memref<4x290xf32, #tpu.memory_space<vmem>>, vector<4x256xf32>,
    %c0_45 = arith.constant 0 : index
    %c0_46 = arith.constant 0 : index
    %48 = vector.load %arg8[%c0_45, %c0_46] : memref<4x290xf32, #tpu.memory_space<vmem>>, vector<4x256xf32>
    %49 = vector.broadcast %2 : vector<1x256xf32> to vector<4x256xf32>
    %50 = arith.mulf %48, %49 : vector<4x256xf32>
    %c0_47 = arith.constant 0 : index
    %c0_48 = arith.constant 0 : index
    %51 = vector.load %arg9[%c0_47, %c0_48] : memref<36x256xf32, #tpu.memory_space<vmem>>, vector<4x256xf32>
    tpu.vector_store %arg9[%c0_47, %c0_48], %50 {strides = array<i32>} : memref<36x256xf32, #tpu.memory_space<vmem>>, vector<4x256xf32>,
    %c0_49 = arith.constant 0 : index
    %c1_50 = arith.constant 1 : index
    %52 = vector.load %arg8[%c0_49, %c1_50] : memref<4x290xf32, #tpu.memory_space<vmem>>, vector<4x256xf32>
    %c4_51 = arith.constant 4 : index
    %c0_52 = arith.constant 0 : index
    %53 = vector.load %arg9[%c4_51, %c0_52] : memref<36x256xf32, #tpu.memory_space<vmem>>, vector<4x256xf32>
    tpu.vector_store %arg9[%c4_51, %c0_52], %52 {strides = array<i32>} : memref<36x256xf32, #tpu.memory_space<vmem>>, vector<4x256xf32>,
    %c0_53 = arith.constant 0 : index
    %c2_54 = arith.constant 2 : index
    %54 = vector.load %arg8[%c0_53, %c2_54] : memref<4x290xf32, #tpu.memory_space<vmem>>, vector<4x256xf32>
    %55 = vector.broadcast %3 : vector<1x256xf32> to vector<4x256xf32>
    %56 = arith.mulf %54, %55 : vector<4x256xf32>
    %c8_55 = arith.constant 8 : index
    %c0_56 = arith.constant 0 : index
    %57 = vector.load %arg9[%c8_55, %c0_56] : memref<36x256xf32, #tpu.memory_space<vmem>>, vector<4x256xf32>
    tpu.vector_store %arg9[%c8_55, %c0_56], %56 {strides = array<i32>} : memref<36x256xf32, #tpu.memory_space<vmem>>, vector<4x256xf32>,
    %c0_57 = arith.constant 0 : index
    %c16_58 = arith.constant 16 : index
    %58 = vector.load %arg8[%c0_57, %c16_58] : memref<4x290xf32, #tpu.memory_space<vmem>>, vector<4x256xf32>
    %59 = vector.broadcast %2 : vector<1x256xf32> to vector<4x256xf32>
    %60 = arith.mulf %58, %59 : vector<4x256xf32>
    %c12_59 = arith.constant 12 : index
    %c0_60 = arith.constant 0 : index
    %61 = vector.load %arg9[%c12_59, %c0_60] : memref<36x256xf32, #tpu.memory_space<vmem>>, vector<4x256xf32>
    tpu.vector_store %arg9[%c12_59, %c0_60], %60 {strides = array<i32>} : memref<36x256xf32, #tpu.memory_space<vmem>>, vector<4x256xf32>,
    %c0_61 = arith.constant 0 : index
    %c17_62 = arith.constant 17 : index
    %62 = vector.load %arg8[%c0_61, %c17_62] : memref<4x290xf32, #tpu.memory_space<vmem>>, vector<4x256xf32>
    %c16_63 = arith.constant 16 : index
    %c0_64 = arith.constant 0 : index
    %63 = vector.load %arg9[%c16_63, %c0_64] : memref<36x256xf32, #tpu.memory_space<vmem>>, vector<4x256xf32>
    tpu.vector_store %arg9[%c16_63, %c0_64], %62 {strides = array<i32>} : memref<36x256xf32, #tpu.memory_space<vmem>>, vector<4x256xf32>,
    %c0_65 = arith.constant 0 : index
    %c18_66 = arith.constant 18 : index
    %64 = vector.load %arg8[%c0_65, %c18_66] : memref<4x290xf32, #tpu.memory_space<vmem>>, vector<4x256xf32>
    %65 = vector.broadcast %3 : vector<1x256xf32> to vector<4x256xf32>
    %66 = arith.mulf %64, %65 : vector<4x256xf32>
    %c20_67 = arith.constant 20 : index
    %c0_68 = arith.constant 0 : index
    %67 = vector.load %arg9[%c20_67, %c0_68] : memref<36x256xf32, #tpu.memory_space<vmem>>, vector<4x256xf32>
    tpu.vector_store %arg9[%c20_67, %c0_68], %66 {strides = array<i32>} : memref<36x256xf32, #tpu.memory_space<vmem>>, vector<4x256xf32>,
    %c0_69 = arith.constant 0 : index
    %c32_70 = arith.constant 32 : index
    %68 = vector.load %arg8[%c0_69, %c32_70] : memref<4x290xf32, #tpu.memory_space<vmem>>, vector<4x256xf32>
    %69 = vector.broadcast %2 : vector<1x256xf32> to vector<4x256xf32>
    %70 = arith.mulf %68, %69 : vector<4x256xf32>
    %c24_71 = arith.constant 24 : index
    %c0_72 = arith.constant 0 : index
    %71 = vector.load %arg9[%c24_71, %c0_72] : memref<36x256xf32, #tpu.memory_space<vmem>>, vector<4x256xf32>
    tpu.vector_store %arg9[%c24_71, %c0_72], %70 {strides = array<i32>} : memref<36x256xf32, #tpu.memory_space<vmem>>, vector<4x256xf32>,
    %c0_73 = arith.constant 0 : index
    %c33_74 = arith.constant 33 : index
    %72 = vector.load %arg8[%c0_73, %c33_74] : memref<4x290xf32, #tpu.memory_space<vmem>>, vector<4x256xf32>
    %c28_75 = arith.constant 28 : index
    %c0_76 = arith.constant 0 : index
    %73 = vector.load %arg9[%c28_75, %c0_76] : memref<36x256xf32, #tpu.memory_space<vmem>>, vector<4x256xf32>
    tpu.vector_store %arg9[%c28_75, %c0_76], %72 {strides = array<i32>} : memref<36x256xf32, #tpu.memory_space<vmem>>, vector<4x256xf32>,
    %c0_77 = arith.constant 0 : index
    %c34_78 = arith.constant 34 : index
    %74 = vector.load %arg8[%c0_77, %c34_78] : memref<4x290xf32, #tpu.memory_space<vmem>>, vector<4x256xf32>
    %75 = vector.broadcast %3 : vector<1x256xf32> to vector<4x256xf32>
    %76 = arith.mulf %74, %75 : vector<4x256xf32>
    %c32_79 = arith.constant 32 : index
    %c0_80 = arith.constant 0 : index
    %77 = vector.load %arg9[%c32_79, %c0_80] : memref<36x256xf32, #tpu.memory_space<vmem>>, vector<4x256xf32>
    tpu.vector_store %arg9[%c32_79, %c0_80], %76 {strides = array<i32>} : memref<36x256xf32, #tpu.memory_space<vmem>>, vector<4x256xf32>,
    %c0_81 = arith.constant 0 : index
    %c0_82 = arith.constant 0 : index
    %78 = vector.load %arg4[%c0_81, %c0_82] : memref<4x36xf32, #tpu.memory_space<vmem>>, vector<4x36xf32>
    %c0_83 = arith.constant 0 : index
    %c0_84 = arith.constant 0 : index
    %79 = vector.load %arg9[%c0_83, %c0_84] : memref<36x256xf32, #tpu.memory_space<vmem>>, vector<36x256xf32>
    %cst_85 = arith.constant dense<0.000000e+00> : vector<4x256xf32>
    %80 = tpu.matmul %78, %79, %cst_85 {dimension_numbers = #tpu.dot_dimension_numbers<[1], [0], [0], [1], [0, 0, 1, 1], [], []>} : vector<4x36xf32>, vector<36x256xf32>, vector<4x256xf32> -> vector<4x256xf32>
    %c0_86 = arith.constant 0 : index
    %c0_87 = arith.constant 0 : index
    %81 = vector.load %arg5[%c0_86, %c0_87] : memref<4x1xf32, #tpu.memory_space<vmem>>, vector<4x1xf32>
    %82 = vector.broadcast %81 : vector<4x1xf32> to vector<4x256xf32>
    %83 = arith.addf %80, %82 : vector<4x256xf32>
    %84 = arith.addf %83, %1 : vector<4x256xf32>
    %c0_88 = arith.constant 0 : index
    %c0_89 = arith.constant 0 : index
    %c0_90 = arith.constant 0 : index
    %85 = vector.load %arg7[%c0_88, %c0_89, %c0_90] : memref<1x4x256xf32, #tpu.memory_space<vmem>>, vector<1x4x256xf32>
    %86 = vector.shape_cast %85 : vector<1x4x256xf32> to vector<4x256xf32>
    %87 = vector.shape_cast %84 : vector<4x256xf32> to vector<1x4x256xf32>
    tpu.vector_store %arg7[%c0_88, %c0_89, %c0_90], %87 {strides = array<i32>} : memref<1x4x256xf32, #tpu.memory_space<vmem>>, vector<1x4x256xf32>,
    return
  }
  func.func @transform_0(%arg0: i32) -> (i32, i32, i32) {
    %c0_i32 = arith.constant 0 : i32
    %c0_i32_0 = arith.constant 0 : i32
    %c0_i32_1 = arith.constant 0 : i32
    return %arg0, %c0_i32, %c0_i32_0 : i32, i32, i32
  }
  func.func @transform_1(%arg0: i32) -> (i32, i32) {
    %c0_i32 = arith.constant 0 : i32
    %c0_i32_0 = arith.constant 0 : i32
    %c0_i32_1 = arith.constant 0 : i32
    return %c0_i32, %c0_i32_0 : i32, i32
  }
  func.func @transform_2(%arg0: i32) -> (i32, i32) {
    %c0_i32 = arith.constant 0 : i32
    %c0_i32_0 = arith.constant 0 : i32
    %c0_i32_1 = arith.constant 0 : i32
    return %c0_i32, %c0_i32_0 : i32, i32
  }
  func.func @transform_3(%arg0: i32) -> (i32, i32) {
    %c0_i32 = arith.constant 0 : i32
    %c0_i32_0 = arith.constant 0 : i32
    %c0_i32_1 = arith.constant 0 : i32
    return %c0_i32, %c0_i32_0 : i32, i32
  }
  func.func @transform_4(%arg0: i32) -> (i32, i32) {
    %c0_i32 = arith.constant 0 : i32
    %c0_i32_0 = arith.constant 0 : i32
    %c0_i32_1 = arith.constant 0 : i32
    return %c0_i32, %c0_i32_0 : i32, i32
  }
  func.func @transform_5(%arg0: i32) -> (i32, i32) {
    %c0_i32 = arith.constant 0 : i32
    %c0_i32_0 = arith.constant 0 : i32
    %c0_i32_1 = arith.constant 0 : i32
    return %c0_i32, %c0_i32_0 : i32, i32
  }
  func.func @transform_6(%arg0: i32) -> (i32, i32, i32) {
    %c0_i32 = arith.constant 0 : i32
    %c0_i32_0 = arith.constant 0 : i32
    %c0_i32_1 = arith.constant 0 : i32
    return %arg0, %c0_i32, %c0_i32_0 : i32, i32, i32
  }
}

</mosaic_0001>

<bundles_post_ra>
// kernel: tpu_custom_call.1
= control target key start
LH: loop header
LB: loop body
LE: loop exit
PB: predicated region body
PF: predicated region fallthrough
CT: control target
= control target key end

     0   :  { %11 = vsyncpa [#allocation5], 0  ;;  %s1591_s0 = inlined_call_operand.hbm [shape: f32[2,4,256], index: 0, kind: input, shape index: {}]   ;;  %s1592_s1 = inlined_call_operand.vmem [shape: f32[4,36], index: 1, kind: input, shape index: {}]   ;;  %s1593_s2 = inlined_call_operand.vmem [shape: f32[4,1], index: 2, kind: input, shape index: {}]   ;;  %s1594_s3 = inlined_call_operand.vmem [shape: f32[4,36], index: 3, kind: input, shape index: {}]   ;;  %s1595_s4 = inlined_call_operand.vmem [shape: f32[4,1], index: 4, kind: input, shape index: {}]   ;;  %s1596_s5 = inlined_call_operand.vmem [shape: f32[2,256], index: 5, kind: input, shape index: {}]   ;;  %s1597_s6 = inlined_call_operand.hbm [shape: f32[2,4,256], index: 6, kind: output, shape index: {}]  }
   0x1   :  { %13 = vsyncpa [#allocation5 + $0x1], 0 }
   0x2   :  { %14 = vsyncpa [#allocation6], 0 }
   0x3   :  { %16 = vsyncpa [#allocation6 + $0x1], 0  ;;  %s1231_s21 = smov 0   ;;  %s1233_s22 = smov 0  }
   0x4   :  { %s1235_s23 = smov 0   ;;  %s1237_s24 = smov 0  }
   0x5 LB: > { %s1252_s25 = sadd.s32 4294967295, %s1176_s24   ;;  %s972_s26 = sadd.s32 4294967294, %s1176_s24   ;;  %s1176_s24 = sphi %s1237_s24, %s1614_s24   ;;  %s1172_s23 = sphi %s1235_s23, %s1613_s23   ;;  %s1168_s22 = sphi %s1233_s22, %s1612_s22   ;;  %s1164_s21 = sphi %s1231_s21, %s1611_s21  }
   0x6   : > { %s1256_s27 = sadd.s32 1, %s1176_s24   ;;  %s29_s28 = sadd.s32 1, %s1172_s23 }
   0x7   : > { %s26_s29 = ssub.s32 %s1176_s24, %s1256_s27  ;;  %p36_p0 = scmp.ne.s32.totalorder %s1172_s23, %s1168_s22 }
   0x8   : > { %p27_p1 = scmp.eq.s32.totalorder %s26_s29, 0  ;;  %p37_p2 = scmp.eq.s32.totalorder %s1176_s24, 0 }
   0x9   : > { %p42_p3 = scmp.ne.s32.totalorder %s1168_s22, %s1164_s21  ;;  %p43_p4 = scmp.eq.s32.totalorder %s1252_s25, 0 }
   0xa   : > { %s1268_s30 = scalar_select %p27_p1, %s1172_s23, %s29_s28  }
   0xb   : > { %p1270_p5 = por %p37_p2, %p36_p0  ;;  %p1274_p6 = por %p43_p4, %p42_p3 }
   0xc   : > { %p171_p7 = scmp.eq.s32.totalorder %s1252_s25, 1  ;;  %p177_p8 = scmp.eq.s32.totalorder %s972_s26, 1 }
   0xd   : > { %p1023_p10 = scmp.lt.s32.totalorder %s1176_s24, 2  ;;  %s212_s11 = sand.u32 1, %s1172_s23  }
   0xe   : > { %p1281_p11 = por %p171_p7, %p36_p0  ;;  %p1285_p12 = por %p177_p8, %p42_p3 }
   0xf   : > { %s993_s12 = sshll.u32 %s1176_s24, 7  ;;  %s975_s13 = sshll.u32 %s212_s11, 3 }
  0x10   : > { %s1601_s9 = scalar_select %p1281_p11, 1, 0 }
  0x11   : > { %s1602_s10 = scalar_select %p1285_p12, 1, 0 }
  0x12   : > { %s1294_s16 = scalar_lea.hbm %s1591_s0, %s993_s12  ;;  %s216_s17 = scalar_lea.vmem [#allocation4], %s975_s13 }
  0x13   : > { %s224_s18 = sshll.u32 %s216_s17, 4  ;;  %p1298_p13 = pnand %p1023_p10, %p1270_p5  ;;  %s1302_s18 = int_to_ptr.vmem [resolvable:$true] %s224_s18 }
  0x14   : > { %s213_s20 = scalar_lea.sflag [#allocation5], %s212_s11  ;;  %s1080_s26 = scalar_lea.hbm %s1294_s16, 128 }
  0x15   : > { %p1081_p2 = scmp.ne.s32.totalorder %s1294_s16, %s1080_s26  ;;  %p1082_p3 = pneg %p1298_p13 }
  0x16   : > { %s1085_s7 = scalar_lea.hbm %s1591_s0, 256  ;;  %p1086_p5 = scmp.lt.u32.totalorder %s1294_s16, %s1591_s0 }
  0x17   : > { %p1083_p4 = pnand %p1082_p3, %p1081_p2  ;;  %p1087_p8 = scmp.lt.u32.totalorder %s1085_s7, %s1080_s26 }
  0x18   : > { %p1089_p9 = scmp.lt.u32.totalorder %s1080_s26, %s1294_s16 }
  0x19   : > { %p1084_p7 = pneg %p1083_p4  ;;  %p1088_p10 = por %p1087_p8, %p1086_p5 }
  0x1b   : > { %p1090_p0 = por %p1089_p9, %p1088_p10 }
  0x1d   : > { %p1091_p1 = pnand %p1090_p0, %p1084_p7 }
  0x1f   : > { %1094 = shalt.err (!%p1091_p1)
}
  0x20   : > { %s1095_s11 = scalar_lea.vmem %s1302_s18, 128  ;;  %s1178_s14 = smov [#allocation4]  }
  0x21   : > { %p1096_p2 = scmp.ne.s32.totalorder %s1302_s18, %s1095_s11  ;;  %s1100_s15 = sshll.u32 %s1178_s14, 4  ;;  %s1101_s15 = int_to_ptr.vmem [resolvable:$false] %s1100_s15 }
  0x22   : > { %s1102_s17 = scalar_lea.vmem %s1101_s15, 256  ;;  %p1103_p11 = scmp.lt.s32.totalorder %s1302_s18, %s1101_s15 }
  0x23   : > { %p1098_p4 = pnand %p1096_p2, %p1082_p3  ;;  %p1104_p5 = scmp.lt.s32.totalorder %s1102_s17, %s1095_s11 }
  0x25   : > { %p1099_p12 = pneg %p1098_p4  ;;  %p1105_p8 = por %p1104_p5, %p1103_p11 }
  0x27   : > { %p1106_p9 = pnand %p1105_p8, %p1099_p12 }
  0x29   : > { %1109 = shalt.err (!%p1106_p9)
}
  0x2a   : > { %1018 = dma.hbm_to_vmem [thread:$0]  (!%p1298_p13), %s1294_s16, 128, %s1302_s18, %s213_s20  }
  0x2b   : > { %p1604_p0 = scmp.lt.s32.totalorder %s1176_s24, 3  ;;  %p1605_p1 = scmp.ge.s32.totalorder %s1176_s24, 1 }
  0x2d   : > { %p230_p3 = pnand %p1605_p1, %p1604_p0 }
  0x2e   : > { %s1336_s26 = sand.u32 (!%p230_p3), 1, %s1168_s22  }
  0x2f   : > { %233 = sbr.rel (%p230_p3) target bundleno = 1101 (0x44d), region = 44  ;;  %s979_s28 = sshll.u32 (!%p230_p3), %s1336_s26, 3 }
  0x30   : > { %s236_s29 = scalar_lea.sflag (!%p230_p3), [#allocation5], %s1336_s26  ;;  %s239_s19 = scalar_lea.vmem (!%p230_p3), [#allocation4], %s979_s28 }
  0x36   : > { %1155 = dma.done.wait (%p1274_p6), %s236_s29, 128  }
  0x37   : > { %1157 = vsyncadd (%p1274_p6), %s236_s29, 4294967168  ;;  %v291_v0 = vlaneseq  ;;  %vm273_vm0 = vcmask 273408   ;;  %v1179_v1 = vmov 0.0   ;;  %v1347_v5 = vld [vmem:[%s239_s19] sm:$0xff]  ;;  %s1180_s20 = smov 17   ;;  %s1181_s12 = smov 16  }
  0x38   : > { %272 = vst [vmem:[#allocation2] sm:$0xff] %v1179_v1  ;;  %274 = vst.msk [vmem:[#allocation2 + $0x8] sm:$0xf] %vm273_vm0, %v1179_v1  ;;  %602 = vmatprep.mubr.f32.mxu0 %v1179_v1  ;;  %871 = vmatprep.mubr.f32.mxu1 %v1179_v1  ;;  %v269_v6 = vld [vmem:[%s1596_s5] ss:$2 sm:$0x3] }
  0x39   : > { %v292_v2 = vshrl.u32 %v291_v0, 7  ;;  %276 = vrot.lane.b32.xlu0 %v1347_v5, %s1180_s20  ;;  %v981_v9 = vld [vmem:[%s1596_s5 + $0x1] ss:$2 sm:$0x3]  ;;  %s1182_s13 = smov 2   ;;  %s1183_s11 = smov 32  }
  0x3a   : > { %s1184_s14 = smov 18   ;;  %s1185_s15 = smov 34   ;;  %vm283_vm1 = vcmask 1043592   ;;  %vm284_vm2 = vcmask 1047556   ;;  %vm279_vm3 = vcmask 138240   ;;  %vm287_vm4 = vcmask 134144  }
  0x3b   : > { %v293_v3 = vsub.s32 0, %v292_v2  ;;  %v297_v4 = vsub.s32 1, %v292_v2  ;;  %vm1361_vm5 = vmor %vm284_vm2, %vm283_vm1  ;;  %s1186_s17 = smov 111   ;;  %s1187_s29 = smov 95   ;;  %vm368_vm6 = vcmask 130048   ;;  %vm341_vm7 = vcmask 15360  }
  0x3c   : > { %s1188_s19 = smov 127   ;;  %s1189_s16 = smov 96   ;;  %vm414_vm8 = vcmask 146432   ;;  %vm442_vm9 = vcmask 261120   ;;  %vm488_vm10 = vcmask 277504   ;;  %v1194_v63 = vmov 0  }
  0x3d   : > { %v294_v7 = vrot.slane %v269_v6, %v293_v3  ;;  %v298_v8 = vrot.slane %v269_v6, %v297_v4  ;;  %v332_v10 = vrot.slane %v981_v9, %v293_v3  ;;  %v336_v11 = vrot.slane %v981_v9, %v297_v4  ;;  %s1190_s18 = smov 126   ;;  %s1191_s8 = smov 112   ;;  %1074 = vset.pattern.permute.xlu1 %v1194_v63  ;;  %v521_v0 = vld [vmem:[%s1593_s2] sm:$0xf] }
  0x3e   : > { %s1192_s7 = smov 110   ;;  %1073 = vset.pattern.permute.xlu0 %v1194_v63  ;;  %vm319_vm11 = vcmask 1039360   ;;  %vm476_vm12 = vcmask 777216   ;;  %vm402_vm13 = vcmask 908288   ;;  %vm430_vm14 = vcmask 900096   ;;  %p1608_p11 = scmp.ne.s32.totalorder %s1601_s9, 0 }
  0x3f   : > { %v1357_v12 = vcombine.low %v294_v7, %v298_v8  ;;  %v337_v13 = vcombine.low %v332_v10, %v336_v11  ;;  %vm356_vm15 = vcmask 1031168   ;;  %vm457_vm1 = vcmask 785408  }
  0x40   : > { %vm503_vm2 = vcmask 769024  }
  0x41   : > { %365 = vrot.lane.b32.xlu1 %v1357_v12, %s1181_s12  ;;  %338 = vrot.lane.b32.xlu0 %v337_v13, %s1182_s13  ;;  %s1193_s12 = smov 94  }
  0x45   : > { %439 = vrot.lane.b32.xlu1 %v1357_v12, %s1183_s11  ;;  %411 = vrot.lane.b32.xlu0 %v337_v13, %s1184_s14  ;;  %s888_s11 = scalar_lea.sflag [#allocation6], %s1336_s26 }
  0x49   : > { %485 = vrot.lane.b32.xlu1 %v337_v13, %s1185_s15 }
  0xab   : > { %v277_v14 = vpop.permute.xlu0 %276 }
  0xac   : > { %v278_v16 = vrot.slane %v277_v14, 4 }
  0xae   : > { %v280_v17 = vsel %vm279_vm3, %v278_v16, %v277_v14  ;;  %288 = vst.msk [vmem:[#allocation2 + $0x8] sm:$0xf] %vm287_vm4, %v278_v16 }
  0xaf   : > { %286 = vst.msk [vmem:[#allocation2] sm:$0xff] %vm1361_vm5, %v280_v17 }
  0xb3   : > { %v366_v18 = vpop.permute.xlu1 %365  ;;  %v339_v30 = vpop.permute.xlu0 %338 }
  0xb4   : > { %v1386_v33 = vrot.slane %v366_v18, 4  ;;  %v1388_v34 = vrot.slane %v339_v30, 4 }
  0xb5   : > { %v392_v20 = vld [vmem:[#allocation2 + $0x8] sm:$0xf] }
  0xb6   : > { %v1369_v21 = vld [vmem:[#allocation2] sm:$0xff]  ;;  %400 = vrot.lane.b32.xlu0 %v392_v20, %s1186_s17  ;;  %v438_v23 = vld [vmem:[#allocation2 + $0x8] sm:$0xf]  ;;  %v1393_v36 = vsel %vm368_vm6, %v1386_v33, %v366_v18  ;;  %v1397_v39 = vsel %vm341_vm7, %v1388_v34, %v339_v30  ;;  %vm531_vm6 = vcmask 1043456   ;;  %vm527_vm7 = vcmask 293888  }
  0xb7   : > { %v440_v19 = vpop.permute.xlu1 %439  ;;  %472 = vrot.lane.b32.xlu1 %v1369_v21, %s1187_s29  ;;  %611 = vst [vmem:[#allocation2] sm:$0xff] %v1179_v1  ;;  %v1076_v24 = vld [vmem:[#allocation2 + $0x8] ss:$0 sps:$4 sm:$0xff]   ;;  %v301_v31 = vmul.f32 %v1357_v12, %v1369_v21  ;;  %v412_v37 = vpop.permute.xlu0 %411  ;;  %v372_v40 = vmul.f32 %v1393_v36, %v1369_v21  ;;  %v345_v42 = vmul.f32 %v1397_v39, %v1369_v21 }
  0xb8   : > { %v1372_v22 = vrot.slane %v440_v19, 4  ;;  %v1077_v25 = vld [vmem:[#allocation2 + $0x8] ss:$0 sps:$4 sm:$0xff]   ;;  %v1403_v41 = vrot.slane %v412_v37, 4  ;;  %v311_v43 = vcombine.low %v1369_v21, %v1369_v21  ;;  %v395_v45 = vcombine.high %v1369_v21, %v1369_v21 }
  0xb9   : > { %v327_v26 = vld [vmem:[#allocation2 + $0x8] sm:$0xf]  ;;  %v303_v35 = vcombine.high %v301_v31, %v301_v31  ;;  %305 = vst [vmem:[#allocation3] sm:$0xf] %v301_v31  ;;  %v349_v51 = vcombine.high %v345_v42, %v345_v42  ;;  %v376_v55 = vcombine.low %v372_v40, %v372_v40 }
  0xba   : > { %v410_v27 = vld [vmem:[#allocation2 + $0x8] sm:$0xf]  ;;  %315 = vrot.lane.b32.xlu0 %v1369_v21, %s1188_s19  ;;  %v447_v32 = vmul.f32 %v1372_v22, %v438_v23  ;;  %v346_v38 = vmul.f32 %v1388_v34, %v327_v26  ;;  %v1415_v46 = vsel %vm414_vm8, %v1403_v41, %v412_v37  ;;  %v1422_v49 = vsel %vm442_vm9, %v1372_v22, %v440_v19 }
  0xbb   : > { %v364_v28 = vld [vmem:[#allocation2 + $0x8] sm:$0xf]  ;;  %396 = vrot.lane.b32.xlu1 %v1369_v21, %s1186_s17  ;;  %306 = vst [vmem:[#allocation3 + $0x8] sm:$0xf] %v303_v35  ;;  %v419_v44 = vmul.f32 %v1403_v41, %v410_v27  ;;  %v418_v48 = vmul.f32 %v1415_v46, %v1369_v21  ;;  %v486_v50 = vpop.permute.xlu1 %485  ;;  %v446_v52 = vmul.f32 %v1422_v49, %v1369_v21 }
  0xbc   : > { %v1376_v29 = vld [vmem:[#allocation2 + $0x8] sm:$0xf]  ;;  %v373_v53 = vmul.f32 %v1386_v33, %v364_v28  ;;  %v1429_v54 = vrot.slane %v486_v50, 4 }
  0xbd   : > { %612 = vst.msk [vmem:[#allocation2 + $0x8] sm:$0xf] %vm273_vm0, %v1179_v1  ;;  %v423_v47 = vcombine.low %v419_v44, %v419_v44  ;;  %v422_v58 = vcombine.low %v418_v48, %v418_v48  ;;  %v450_v60 = vcombine.high %v446_v52, %v446_v52  ;;  %vm384_vm0 = vcmask 916480  }
  0xbe   : > { %455 = vrot.lane.b32.xlu0 %v447_v32, %s1189_s16  ;;  %v377_v56 = vcombine.low %v373_v53, %v373_v53  ;;  %v1434_v57 = vsel %vm488_vm10, %v1429_v54, %v486_v50  ;;  %v493_v62 = vmul.f32 %v1429_v54, %v1376_v29 }
  0xbf   : > { %317 = vrot.lane.b32.xlu1 %v1076_v24, %s1188_s19  ;;  %v492_v59 = vmul.f32 %v1434_v57, %v1369_v21 }
  0xc1   : > { %v496_v61 = vcombine.high %v492_v59, %v492_v59 }
  0xc2   : > { %474 = vrot.lane.b32.xlu0 %v1077_v25, %s1187_s29 }
  0xc3   : > { %354 = vrot.lane.b32.xlu1 %v346_v38, %s1190_s18 }
  0xc6   : > { %380 = vrot.lane.b32.xlu0 %v372_v40, %s1191_s8 }
  0xc7   : > { %350 = vrot.lane.b32.xlu1 %v345_v42, %s1190_s18 }
  0xca   : > { %313 = vrot.lane.b32.xlu0 %v311_v43, %s1188_s19 }
  0xcb   : > { %398 = vrot.lane.b32.xlu1 %v395_v45, %s1186_s17 }
  0xce   : > { %428 = vrot.lane.b32.xlu0 %v423_v47, %s1192_s7 }
  0xcf   : > { %426 = vrot.lane.b32.xlu1 %v418_v48, %s1192_s7 }
  0xd2   : > { %352 = vrot.lane.b32.xlu0 %v349_v51, %s1190_s18 }
  0xd3   : > { %451 = vrot.lane.b32.xlu1 %v446_v52, %s1189_s16 }
  0xd6   : > { %378 = vrot.lane.b32.xlu0 %v376_v55, %s1191_s8 }
  0xd7   : > { %382 = vrot.lane.b32.xlu1 %v377_v56, %s1191_s8 }
  0xda   : > { %424 = vrot.lane.b32.xlu0 %v422_v58, %s1192_s7 }
  0xdb   : > { %453 = vrot.lane.b32.xlu1 %v450_v60, %s1189_s16 }
  0xde   : > { %470 = vrot.lane.b32.xlu0 %v311_v43, %s1187_s29 }
  0xdf   : > { %499 = vrot.lane.b32.xlu1 %v496_v61, %s1193_s12 }
  0xe2   : > { %501 = vrot.lane.b32.xlu0 %v493_v62, %s1193_s12 }
  0xe3   : > { %497 = vrot.lane.b32.xlu1 %v492_v59, %s1193_s12 }
  0xe6   : > { %524 = vperm.xlu0 %1073, %v521_v0  }
 0x128   : > { %v401_v1 = vpop.permute.xlu0 %400 }
 0x129   : > { %v473_v2 = vpop.permute.xlu1 %472 }
 0x12c   : > { %v316_v3 = vpop.permute.xlu0 %315 }
 0x12d   : > { %v397_v4 = vpop.permute.xlu1 %396 }
 0x130   : > { %v456_v6 = vpop.permute.xlu0 %455 }
 0x131   : > { %v318_v7 = vpop.permute.xlu1 %317 }
 0x132   : > { %v321_v8 = vsel %vm319_vm11, %v316_v3, %v318_v7 }
 0x133   : > { %325 = vst [vmem:[#allocation3 + $0x8] sm:$0xf0] %v321_v8 }
 0x134   : > { %v475_v9 = vpop.permute.xlu0 %474 }
 0x135   : > { %v478_v10 = vsel %vm476_vm12, %v473_v2, %v475_v9  ;;  %v355_v11 = vpop.permute.xlu1 %354 }
 0x136   : > { %482 = vst [vmem:[#allocation3 + $0x38] sm:$0xf0] %v478_v10 }
 0x138   : > { %v381_v13 = vpop.permute.xlu0 %380 }
 0x139   : > { %v351_v14 = vpop.permute.xlu1 %350 }
 0x13a   : > { %v512_v48 = vld [vmem:[#allocation3 + $0x8] sm:$0xff] }
 0x13c   : > { %v314_v16 = vpop.permute.xlu0 %313 }
 0x13d   : > { %v320_v17 = vsel %vm319_vm11, %v314_v16, %v316_v3  ;;  %v399_v18 = vpop.permute.xlu1 %398 }
 0x13e   : > { %324 = vst [vmem:[#allocation3] sm:$0xf0] %v320_v17  ;;  %v403_v19 = vsel %vm402_vm13, %v397_v4, %v399_v18  ;;  %v404_v20 = vsel %vm402_vm13, %v399_v18, %v401_v1  ;;  %v510_v4 = vld [vmem:[%s1592_s1] sm:$0xf] }
 0x13f   : > { %407 = vst [vmem:[#allocation3 + $0x20] sm:$0xf] %v403_v19  ;;  %408 = vst [vmem:[#allocation3 + $0x28] sm:$0xf] %v404_v20 }
 0x140   : > { %v429_v21 = vpop.permute.xlu0 %428 }
 0x141   : > { %v427_v23 = vpop.permute.xlu1 %426 }
 0x142   : > { %v432_v24 = vsel %vm430_vm14, %v427_v23, %v429_v21 }
 0x143   : > { %436 = vst [vmem:[#allocation3 + $0x28] sm:$0xf0] %v432_v24 }
 0x144   : > { %v353_v25 = vpop.permute.xlu0 %352 }
 0x145   : > { %v357_v26 = vsel %vm356_vm15, %v351_v14, %v353_v25  ;;  %v358_v27 = vsel %vm356_vm15, %v353_v25, %v355_v11  ;;  %v452_v28 = vpop.permute.xlu1 %451  ;;  %v511_v52 = vld [vmem:[#allocation3] sm:$0xff] }
 0x146   : > { %361 = vst [vmem:[#allocation3 + $0x10] sm:$0xf] %v357_v26  ;;  %362 = vst [vmem:[#allocation3 + $0x18] sm:$0xf] %v358_v27 }
 0x148   : > { %v379_v29 = vpop.permute.xlu0 %378 }
 0x149   : > { %v385_v30 = vsel %vm384_vm0, %v379_v29, %v381_v13  ;;  %v383_v31 = vpop.permute.xlu1 %382 }
 0x14a   : > { %389 = vst [vmem:[#allocation3 + $0x10] sm:$0xf0] %v385_v30  ;;  %v386_v32 = vsel %vm384_vm0, %v381_v13, %v383_v31  ;;  %v516_v60 = vld [vmem:[#allocation3 + $0x28] sm:$0xff] }
 0x14b   : > { %390 = vst [vmem:[#allocation3 + $0x18] sm:$0xf0] %v386_v32 }
 0x14c   : > { %v425_v35 = vpop.permute.xlu0 %424 }
 0x14d   : > { %v431_v37 = vsel %vm430_vm14, %v425_v35, %v427_v23  ;;  %v454_v38 = vpop.permute.xlu1 %453 }
 0x14e   : > { %435 = vst [vmem:[#allocation3 + $0x20] sm:$0xf0] %v431_v37  ;;  %v458_v40 = vsel %vm457_vm1, %v452_v28, %v454_v38  ;;  %v459_v42 = vsel %vm457_vm1, %v454_v38, %v456_v6 }
 0x14f   : > { %462 = vst [vmem:[#allocation3 + $0x30] sm:$0xf] %v458_v40  ;;  %463 = vst [vmem:[#allocation3 + $0x38] sm:$0xf] %v459_v42 }
 0x150   : > { %v471_v43 = vpop.permute.xlu0 %470 }
 0x151   : > { %v477_v44 = vsel %vm476_vm12, %v471_v43, %v473_v2  ;;  %v500_v45 = vpop.permute.xlu1 %499  ;;  %v513_v47 = vld [vmem:[#allocation3 + $0x10] sm:$0xff] }
 0x152   : > { %481 = vst [vmem:[#allocation3 + $0x30] sm:$0xf0] %v477_v44  ;;  %v514_v50 = vld [vmem:[#allocation3 + $0x18] sm:$0xff]  ;;  %v997_v55 = vpack.c.bf16 %v513_v47, %v511_v52 }
 0x153   : > { %v995_v51 = vpack.c.bf16 %v514_v50, %v512_v48 }
 0x154   : > { %v502_v53 = vpop.permute.xlu0 %501 }
 0x155   : > { %v505_v56 = vsel %vm503_vm2, %v500_v45, %v502_v53  ;;  %v498_v58 = vpop.permute.xlu1 %497  ;;  %996 = vmatprep.subr.bf16.mxu0 %v995_v51  ;;  %v515_v63 = vld [vmem:[#allocation3 + $0x20] sm:$0xff] }
 0x156   : > { %509 = vst [vmem:[#allocation3 + $0x48] sm:$0xf] %v505_v56  ;;  %v504_v59 = vsel %vm503_vm2, %v498_v58, %v500_v45  ;;  %998 = vmatpush1.bf16.msra.mxu0 %v997_v55  ;;  %v518_v61 = vld [vmem:[#allocation3 + $0x38] sm:$0xff] }
 0x157   : > { %508 = vst [vmem:[#allocation3 + $0x40] sm:$0xf] %v504_v59  ;;  %v999_v62 = vpack.c.bf16 %v518_v61, %v516_v60 }
 0x159   : > { %1000 = vmatprep.subr.bf16.mxu0 %v999_v62  ;;  %v517_v0 = vld [vmem:[#allocation3 + $0x30] sm:$0xff] }
 0x15a   : > { %v1001_v1 = vpack.c.bf16 %v517_v0, %v515_v63 }
 0x15c   : > { %1002 = vmatpush1.bf16.msra.mxu0 %v1001_v1 }
 0x15d   : > { %v520_v2 = vld [vmem:[#allocation3 + $0x48] sm:$0xf] }
 0x15e   : > { %982 = vmatprep.subr.msk.mxu0 %vm531_vm6, %v520_v2  ;;  %v519_v3 = vld [vmem:[#allocation3 + $0x40] sm:$0xf] }
 0x160   : > { %983 = vmatpush1.msk.msra.mxu0 %vm531_vm6, %v519_v3 }
 0x161   : > { %984 = vmatmul.mubr.msk.f32.vlgmr.msra.gmra.mrb[0].mxu0 %vm527_vm7, %v510_v4 }
 0x165   : > { %v525_v6 = vpop.permute.xlu0 %524 }
 0x234   : > { %v604_v7 = vpop.f32.mrb[0].mxu0 }
 0x235   : > { %v605_v8 = vadd.f32 %v604_v7, %v525_v6  ;;  %v606_v9 = vpop.f32.mrb[1].mxu0 }
 0x236   : > { %v607_v10 = vadd.f32 %v606_v9, %v525_v6 }
 0x237   : > { %v609_v11 = vmax.f32 %v605_v8, 0.0 }
 0x238   : > { %v610_v13 = vmax.f32 %v607_v10, 0.0 }
 0x23a   : > { %v615_v14 = vcombine.low %v609_v11, %v610_v13 }
 0x23c   : > { %616 = vrot.lane.b32.xlu1 %v615_v14, %s1180_s20 }
 0x2ae   : > { %v617_v16 = vpop.permute.xlu1 %616 }
 0x2af   : > { %v618_v17 = vrot.slane %v617_v16, 4 }
 0x2b1   : > { %v619_v18 = vsel %vm279_vm3, %v618_v17, %v617_v16  ;;  %623 = vst.msk [vmem:[#allocation2 + $0x8] sm:$0xf] %vm287_vm4, %v618_v17 }
 0x2b2   : > { %622 = vst.msk [vmem:[#allocation2] sm:$0xff] %vm1361_vm5, %v619_v18 }
 0x2b8   : > { %v689_v19 = vld [vmem:[#allocation2 + $0x8] sm:$0xf] }
 0x2b9   : > { %v624_v20 = vld [vmem:[#allocation2] sm:$0xff]  ;;  %697 = vrot.lane.b32.xlu1 %v689_v19, %s1186_s17  ;;  %v726_v24 = vld [vmem:[#allocation2 + $0x8] sm:$0xf] }
 0x2ba   : > { %v625_v21 = vmul.f32 %v624_v20, %v1357_v12  ;;  %752 = vrot.lane.b32.xlu0 %v624_v20, %s1187_s29  ;;  %v728_v25 = vmul.f32 %v726_v24, %v1372_v22  ;;  %v1078_v15 = vld [vmem:[#allocation2 + $0x8] ss:$0 sps:$4 sm:$0xff]   ;;  %v670_v28 = vmul.f32 %v624_v20, %v1393_v36  ;;  %v651_v29 = vmul.f32 %v624_v20, %v1397_v39 }
 0x2bb   : > { %v650_v26 = vld [vmem:[#allocation2 + $0x8] sm:$0xf]  ;;  %v748_v22 = vcombine.low %v624_v20, %v624_v20  ;;  %v692_v32 = vcombine.high %v624_v20, %v624_v20  ;;  %v707_v35 = vmul.f32 %v624_v20, %v1415_v46  ;;  %v727_v37 = vmul.f32 %v624_v20, %v1422_v49 }
 0x2bc   : > { %v627_v23 = vcombine.high %v625_v21, %v625_v21  ;;  %629 = vst [vmem:[#allocation3] sm:$0xf] %v625_v21  ;;  %v1079_v27 = vld [vmem:[#allocation2 + $0x8] ss:$0 sps:$4 sm:$0xff]   ;;  %v652_v12 = vmul.f32 %v650_v26, %v1388_v34  ;;  %v655_v39 = vcombine.high %v651_v29, %v651_v29  ;;  %v764_v43 = vmul.f32 %v624_v20, %v1434_v57  ;;  %v792_v57 = vld [vmem:[%s1595_s4] sm:$0xf] }
 0x2bd   : > { %639 = vrot.lane.b32.xlu1 %v624_v20, %s1188_s19  ;;  %v706_v30 = vld [vmem:[#allocation2 + $0x8] sm:$0xf]  ;;  %v711_v46 = vcombine.low %v707_v35, %v707_v35  ;;  %v731_v42 = vcombine.high %v727_v37, %v727_v37 }
 0x2be   : > { %630 = vst [vmem:[#allocation3 + $0x8] sm:$0xf] %v627_v23  ;;  %693 = vrot.lane.b32.xlu0 %v624_v20, %s1186_s17  ;;  %v708_v31 = vmul.f32 %v706_v30, %v1403_v41  ;;  %v669_v36 = vld [vmem:[#allocation2 + $0x8] sm:$0xf]  ;;  %v674_v41 = vcombine.low %v670_v28, %v670_v28  ;;  %v768_v49 = vcombine.high %v764_v43, %v764_v43 }
 0x2bf   : > { %v671_v38 = vmul.f32 %v669_v36, %v1386_v33  ;;  %v763_v33 = vld [vmem:[#allocation2 + $0x8] sm:$0xf] }
 0x2c0   : > { %v712_v34 = vcombine.low %v708_v31, %v708_v31  ;;  %v765_v44 = vmul.f32 %v763_v33, %v1429_v54 }
 0x2c1   : > { %736 = vrot.lane.b32.xlu1 %v728_v25, %s1189_s16  ;;  %v675_v40 = vcombine.low %v671_v38, %v671_v38 }
 0x2c2   : > { %641 = vrot.lane.b32.xlu0 %v1078_v15, %s1188_s19 }
 0x2c5   : > { %754 = vrot.lane.b32.xlu1 %v1079_v27, %s1187_s29 }
 0x2c6   : > { %660 = vrot.lane.b32.xlu0 %v652_v12, %s1190_s18 }
 0x2c9   : > { %678 = vrot.lane.b32.xlu1 %v670_v28, %s1191_s8 }
 0x2ca   : > { %656 = vrot.lane.b32.xlu0 %v651_v29, %s1190_s18 }
 0x2cd   : > { %637 = vrot.lane.b32.xlu1 %v748_v22, %s1188_s19 }
 0x2ce   : > { %695 = vrot.lane.b32.xlu0 %v692_v32, %s1186_s17 }
 0x2d1   : > { %717 = vrot.lane.b32.xlu1 %v712_v34, %s1192_s7 }
 0x2d2   : > { %715 = vrot.lane.b32.xlu0 %v707_v35, %s1192_s7 }
 0x2d5   : > { %658 = vrot.lane.b32.xlu1 %v655_v39, %s1190_s18  ;;  %s267_s18 = scalar_lea.vmem [#allocation7], %s979_s28 }
 0x2d6   : > { %732 = vrot.lane.b32.xlu0 %v727_v37, %s1189_s16 }
 0x2d9   : > { %676 = vrot.lane.b32.xlu1 %v674_v41, %s1191_s8  ;;  %v781_v41 = vld [vmem:[%s1594_s3] sm:$0xf] }
 0x2da   : > { %680 = vrot.lane.b32.xlu0 %v675_v40, %s1191_s8  ;;  %s902_s8 = sshll.u32 %s267_s18, 4  ;;  %s1549_s8 = int_to_ptr.vmem [resolvable:$true] %s902_s8 }
 0x2db   : > { %s1110_s14 = scalar_lea.vmem %s1549_s8, 128 }
 0x2dc   : > { %p1111_p6 = scmp.ne.s32.totalorder %s1549_s8, %s1110_s14 }
 0x2dd   : > { %713 = vrot.lane.b32.xlu1 %v711_v46, %s1192_s7  ;;  %v878_v46 = vcombine.high %v1347_v5, %v1347_v5 }
 0x2de   : > { %734 = vrot.lane.b32.xlu0 %v731_v42, %s1189_s16  ;;  %s994_s16 = sshll.u32 %s1252_s25, 7  ;;  %p1112_p12 = pnand %p1111_p6, %p1608_p11 }
 0x2df   : > { %s1547_s13 = scalar_lea.hbm %s1597_s6, %s994_s16  ;;  %s1195_s25 = smov [#allocation7]  }
 0x2e0   : > { %p1113_p13 = pneg %p1112_p12  ;;  %s1114_s28 = sshll.u32 %s1195_s25, 4  ;;  %s1115_s28 = int_to_ptr.vmem [resolvable:$false] %s1114_s28 }
 0x2e1   : > { %750 = vrot.lane.b32.xlu1 %v748_v22, %s1187_s29  ;;  %s1116_s15 = scalar_lea.vmem %s1115_s28, 256  ;;  %p1117_p7 = scmp.lt.s32.totalorder %s1549_s8, %s1115_s28 }
 0x2e2   : > { %771 = vrot.lane.b32.xlu0 %v768_v49, %s1193_s12  ;;  %p1118_p10 = scmp.lt.s32.totalorder %s1116_s15, %s1110_s14 }
 0x2e4   : > { %p1119_p2 = por %p1118_p10, %p1117_p7 }
 0x2e5   : > { %773 = vrot.lane.b32.xlu1 %v765_v44, %s1193_s12 }
 0x2e6   : > { %769 = vrot.lane.b32.xlu0 %v764_v43, %s1193_s12  ;;  %p1120_p4 = pnand %p1119_p2, %p1113_p13 }
 0x2e9   : > { %795 = vperm.xlu1 %1074, %v792_v57  }
 0x32b   : > { %v698_v45 = vpop.permute.xlu1 %697 }
 0x32c   : > { %v753_v47 = vpop.permute.xlu0 %752 }
 0x32f   : > { %v640_v48 = vpop.permute.xlu1 %639 }
 0x330   : > { %v694_v50 = vpop.permute.xlu0 %693 }
 0x333   : > { %v737_v51 = vpop.permute.xlu1 %736 }
 0x334   : > { %v642_v52 = vpop.permute.xlu0 %641 }
 0x335   : > { %v644_v53 = vsel %vm319_vm11, %v640_v48, %v642_v52 }
 0x336   : > { %648 = vst [vmem:[#allocation3 + $0x8] sm:$0xf0] %v644_v53 }
 0x337   : > { %v755_v55 = vpop.permute.xlu1 %754 }
 0x338   : > { %v757_v54 = vsel %vm476_vm12, %v753_v47, %v755_v55  ;;  %v661_v56 = vpop.permute.xlu0 %660 }
 0x339   : > { %761 = vst [vmem:[#allocation3 + $0x38] sm:$0xf0] %v757_v54 }
 0x33b   : > { %v679_v58 = vpop.permute.xlu1 %678 }
 0x33c   : > { %v657_v59 = vpop.permute.xlu0 %656 }
 0x33d   : > { %v783_v25 = vld [vmem:[#allocation3 + $0x8] sm:$0xff] }
 0x33f   : > { %v638_v60 = vpop.permute.xlu1 %637 }
 0x340   : > { %v643_v61 = vsel %vm319_vm11, %v638_v60, %v640_v48  ;;  %v696_v62 = vpop.permute.xlu0 %695 }
 0x341   : > { %647 = vst [vmem:[#allocation3] sm:$0xf0] %v643_v61  ;;  %v699_v63 = vsel %vm402_vm13, %v694_v50, %v696_v62  ;;  %v700_v0 = vsel %vm402_vm13, %v696_v62, %v698_v45 }
 0x342   : > { %703 = vst [vmem:[#allocation3 + $0x20] sm:$0xf] %v699_v63  ;;  %704 = vst [vmem:[#allocation3 + $0x28] sm:$0xf] %v700_v0 }
 0x343   : > { %v718_v1 = vpop.permute.xlu1 %717 }
 0x344   : > { %v716_v2 = vpop.permute.xlu0 %715 }
 0x345   : > { %v720_v3 = vsel %vm430_vm14, %v716_v2, %v718_v1 }
 0x346   : > { %724 = vst [vmem:[#allocation3 + $0x28] sm:$0xf0] %v720_v3 }
 0x347   : > { %v659_v4 = vpop.permute.xlu1 %658 }
 0x348   : > { %v662_v6 = vsel %vm356_vm15, %v657_v59, %v659_v4  ;;  %v663_v7 = vsel %vm356_vm15, %v659_v4, %v661_v56  ;;  %v733_v8 = vpop.permute.xlu0 %732  ;;  %v782_v27 = vld [vmem:[#allocation3] sm:$0xff] }
 0x349   : > { %666 = vst [vmem:[#allocation3 + $0x10] sm:$0xf] %v662_v6  ;;  %667 = vst [vmem:[#allocation3 + $0x18] sm:$0xf] %v663_v7 }
 0x34b   : > { %v677_v9 = vpop.permute.xlu1 %676 }
 0x34c   : > { %v682_v10 = vsel %vm384_vm0, %v677_v9, %v679_v58  ;;  %v681_v11 = vpop.permute.xlu0 %680 }
 0x34d   : > { %686 = vst [vmem:[#allocation3 + $0x10] sm:$0xf0] %v682_v10  ;;  %v683_v13 = vsel %vm384_vm0, %v679_v58, %v681_v11  ;;  %v787_v31 = vld [vmem:[#allocation3 + $0x28] sm:$0xff] }
 0x34e   : > { %687 = vst [vmem:[#allocation3 + $0x18] sm:$0xf0] %v683_v13 }
 0x34f   : > { %v714_v14 = vpop.permute.xlu1 %713 }
 0x350   : > { %v719_v16 = vsel %vm430_vm14, %v714_v14, %v716_v2  ;;  %v735_v17 = vpop.permute.xlu0 %734 }
 0x351   : > { %723 = vst [vmem:[#allocation3 + $0x20] sm:$0xf0] %v719_v16  ;;  %v738_v18 = vsel %vm457_vm1, %v733_v8, %v735_v17  ;;  %v739_v19 = vsel %vm457_vm1, %v735_v17, %v737_v51 }
 0x352   : > { %742 = vst [vmem:[#allocation3 + $0x30] sm:$0xf] %v738_v18  ;;  %743 = vst [vmem:[#allocation3 + $0x38] sm:$0xf] %v739_v19 }
 0x353   : > { %v751_v20 = vpop.permute.xlu1 %750 }
 0x354   : > { %v756_v21 = vsel %vm476_vm12, %v751_v20, %v753_v47  ;;  %v772_v23 = vpop.permute.xlu0 %771  ;;  %v784_v24 = vld [vmem:[#allocation3 + $0x10] sm:$0xff] }
 0x355   : > { %760 = vst [vmem:[#allocation3 + $0x30] sm:$0xf0] %v756_v21  ;;  %v785_v15 = vld [vmem:[#allocation3 + $0x18] sm:$0xff]  ;;  %v1005_v28 = vpack.c.bf16 %v784_v24, %v782_v27 }
 0x356   : > { %v1003_v26 = vpack.c.bf16 %v785_v15, %v783_v25 }
 0x357   : > { %v774_v12 = vpop.permute.xlu1 %773 }
 0x358   : > { %v776_v29 = vsel %vm503_vm2, %v772_v23, %v774_v12  ;;  %v770_v30 = vpop.permute.xlu0 %769  ;;  %1004 = vmatprep.subr.bf16.mxu1 %v1003_v26  ;;  %v786_v35 = vld [vmem:[#allocation3 + $0x20] sm:$0xff] }
 0x359   : > { %780 = vst [vmem:[#allocation3 + $0x48] sm:$0xf] %v776_v29  ;;  %v775_v22 = vsel %vm503_vm2, %v770_v30, %v772_v23  ;;  %1006 = vmatpush1.bf16.msra.mxu1 %v1005_v28  ;;  %v789_v32 = vld [vmem:[#allocation3 + $0x38] sm:$0xff] }
 0x35a   : > { %779 = vst [vmem:[#allocation3 + $0x40] sm:$0xf] %v775_v22  ;;  %v1007_v34 = vpack.c.bf16 %v789_v32, %v787_v31 }
 0x35c   : > { %1008 = vmatprep.subr.bf16.mxu1 %v1007_v34  ;;  %v788_v36 = vld [vmem:[#allocation3 + $0x30] sm:$0xff] }
 0x35d   : > { %v1009_v39 = vpack.c.bf16 %v788_v36, %v786_v35 }
 0x35f   : > { %1010 = vmatpush1.bf16.msra.mxu1 %v1009_v39 }
 0x360   : > { %v791_v37 = vld [vmem:[#allocation3 + $0x48] sm:$0xf] }
 0x361   : > { %985 = vmatprep.subr.msk.mxu1 %vm531_vm6, %v791_v37  ;;  %v790_v38 = vld [vmem:[#allocation3 + $0x40] sm:$0xf] }
 0x363   : > { %986 = vmatpush1.msk.msra.mxu1 %vm531_vm6, %v790_v38 }
 0x364   : > { %987 = vmatmul.mubr.msk.f32.vlgmr.msra.gmra.mrb[0].mxu1 %vm527_vm7, %v781_v41 }
 0x368   : > { %v796_v40 = vpop.permute.xlu1 %795 }
 0x437   : > { %v873_v42 = vpop.f32.mrb[0].mxu1 }
 0x438   : > { %v874_v43 = vadd.f32 %v873_v42, %v796_v40  ;;  %v875_v49 = vpop.f32.mrb[1].mxu1 }
 0x439   : > { %v876_v33 = vadd.f32 %v875_v49, %v796_v40 }
 0x43a   : > { %v880_v44 = vadd.f32 %v874_v43, %v1347_v5 }
 0x43b   : > { %v881_v57 = vadd.f32 %v878_v46, %v876_v33 }
 0x43d   : > { %v884_v45 = vcombine.low %v880_v44, %v881_v57 }
 0x43f   : > { %886 = vst [vmem:[%s267_s18] sm:$0xff] %v884_v45 }
 0x440   : > { %1123 = shalt.err (!%p1120_p4)
}
 0x441   : > { %s1124_s26 = scalar_lea.hbm %s1547_s13, 128  ;;  %s1128_s29 = scalar_lea.hbm %s1597_s6, 256 }
 0x442   : > { %p1125_p5 = scmp.ne.s32.totalorder %s1547_s13, %s1124_s26  ;;  %p1129_p0 = scmp.lt.u32.totalorder %s1547_s13, %s1597_s6 }
 0x443   : > { %p1130_p1 = scmp.lt.u32.totalorder %s1128_s29, %s1124_s26  ;;  %p1132_p6 = scmp.lt.u32.totalorder %s1124_s26, %s1547_s13 }
 0x444   : > { %p1126_p8 = pnand %p1125_p5, %p1608_p11 }
 0x445   : > { %p1131_p3 = por %p1130_p1, %p1129_p0 }
 0x446   : > { %p1127_p9 = pneg %p1126_p8 }
 0x447   : > { %p1133_p12 = por %p1132_p6, %p1131_p3 }
 0x449   : > { %p1134_p13 = pnand %p1133_p12, %p1127_p9 }
 0x44b   : > { %1137 = shalt.err (!%p1134_p13)
}
 0x44c   : > { %1013 = dma.vmem_to_hbm [thread:$0]  (%p1608_p11), %s1549_s8, 128, %s1547_s13, %s888_s11  }
 0x44d PF: > { %s914_s18 = sand.u32 1, %s1164_s21   ;;  %p1609_p7 = scmp.ne.s32.totalorder %s1602_s10, 0 }
 0x44e   : > { %p1610_p10 = scmp.ge.s32.totalorder %s1176_s24, 2  ;;  %s915_s7 = scalar_lea.sflag [#allocation6], %s914_s18 }
 0x450   : > { %p1020_p2 = pnand %p1610_p10, %p1609_p7 }
 0x452   : > { %1159 = dma.done.wait (!%p1020_p2), %s915_s7, 128  }
 0x453   : > { %1161 = vsyncadd (!%p1020_p2), %s915_s7, 4294967168  ;;  %p19_p4 = scmp.ge.s32.totalorder %s1256_s27, 4   ;;  %s1611_s21 = smov %s1168_s22 }
 0x454   : > { %s1612_s22 = smov %s1172_s23  ;;  %s1613_s23 = smov %s1268_s30 }
 0x455   : > { %s1614_s24 = smov %s1256_s27  ;;  %21 = sbr.rel (!%p19_p4) target bundleno = 5 (0x5), region = 90 }
 0x45c   :  { %920 = vsyncpa [#allocation5], 1 }
 0x45d   :  { %922 = vsyncpa [#allocation5 + $0x1], 1 }
 0x45e   :  { %923 = vsyncpa [#allocation6], 1 }
 0x45f   :  { %925 = vsyncpa [#allocation6 + $0x1], 1 }

</bundles_post_ra>
